<compile_context>
chip_gen: v6e
topology: v6e:2x2x1
jax: 0.10.0
libtpu: 0.0.40
codegen_flags: <defaults>
</compile_context>

<pallas_src>
import jax
import jax.numpy as jnp
from jax.experimental import pallas as pl
from jax.experimental.pallas import tpu as pltpu

_LANE = 128


def _round_up(n, m):
    return ((n + m - 1) // m) * m


def _cdiv(a, b):
    return (a + b - 1) // b


def _vmem_capacity_bytes():
    try:
        return int(pltpu.get_tpu_info().vmem_capacity_bytes)
    except Exception:
        return 64 * 1024 * 1024  # conservative fallback: v7x per-TensorCore VMEM


def _vmem_need(tm, tk, in_p, out_p, csz, osz):
    """Worst-case VMEM working set for one grid step (inputs double-buffered)."""
    return (2 * tm * in_p * csz          # x tile (double-buffered by BlockSpec)
            + 2 * in_p * tk * csz        # W1 chunk (double-buffered)
            + 2 * tk * out_p * csz       # W2 chunk (double-buffered)
            + 2 * tm * out_p * osz       # out tile (double-buffered)
            + tm * out_p * 4             # f32 accumulator scratch
            + tm * tk * (4 + csz)        # h (f32) + cast-to-compute temporary
            + 2 * (tk + out_p) * 4)      # biases (double-buffered, tiny)


def mlp_kernel(x_ref, w1_ref, b1_ref, w2_ref, b2_ref, o_ref, acc_ref):
    k = pl.program_id(1)

    @pl.when(k == 0)
    def _():
        acc_ref[...] = jnp.zeros_like(acc_ref)

    # First linear, one mid-chunk at a time: full K (= in_p) contraction,
    # so bias + ReLU per chunk is exact.
    h = jnp.dot(x_ref[...], w1_ref[...], preferred_element_type=jnp.float32)
    h = jnp.maximum(h + b1_ref[...], 0.0)          # b1 chunk is (1, tk) f32

    # Second linear: accumulate partial products over mid chunks in f32.
    acc_ref[...] += jnp.dot(h.astype(w2_ref.dtype), w2_ref[...],
                            preferred_element_type=jnp.float32)

    @pl.when(k == pl.num_programs(1) - 1)
    def _():
        o_ref[...] = (acc_ref[...] + b2_ref[...]).astype(o_ref.dtype)


def prepare_mlp_params(w1_t, b1, w2_t, b2, *, compute_dtype=jnp.bfloat16,
                       block_batch=256, mid_chunk=None, vmem_budget=None):
    """One-time weight prep: lane-align, cast, and plan the mid chunk size.

    w1_t: [in, mid], b1: [mid], w2_t: [mid, out], b2: [out].
    """
    in_size, mid_size = w1_t.shape
    out_size = w2_t.shape[1]
    csz = jnp.dtype(compute_dtype).itemsize

    in_p = _round_up(in_size, _LANE)
    out_p = _round_up(out_size, _LANE)
    tm_cap = max(_LANE, _round_up(block_batch, _LANE))

    if vmem_budget is None:
        # Target ~75% of per-core VMEM for the pipelined working set.
        vmem_budget = _vmem_capacity_bytes() * 3 // 4

    if mid_chunk is not None:
        tk = max(_LANE, _round_up(mid_chunk, _LANE))
        mid_p = _round_up(mid_size, tk)
    else:
        mid_p = _round_up(mid_size, _LANE)
        m = mid_p // _LANE
        # Candidate chunk sizes: multiples of 128 that divide mid_p exactly.
        cands = sorted((d * _LANE for d in range(1, m + 1)
                        if m % d == 0 and d * _LANE <= 2048), reverse=True)
        tk = cands[-1]  # fallback: 128
        for c in cands:  # largest chunk whose working set fits the budget
            if _vmem_need(tm_cap, c, in_p, out_p, csz, 4) <= vmem_budget:
                tk = c
                break

    def _pad2(a, rows, cols, dtype):
        if a.shape == (rows, cols) and a.dtype == dtype:
            return a  # already aligned: no per-param HBM copy
        return jnp.zeros((rows, cols), dtype).at[:a.shape[0], :a.shape[1]].set(
            a.astype(dtype))

    params = dict(
        w1=_pad2(w1_t, in_p, mid_p, compute_dtype),
        b1=_pad2(b1.reshape(1, -1), 1, mid_p, jnp.float32),
        w2=_pad2(w2_t, mid_p, out_p, compute_dtype),
        b2=_pad2(b2.reshape(1, -1), 1, out_p, jnp.float32),
        in_size=in_size, mid_size=mid_size, out_size=out_size,
        in_p=in_p, mid_p=mid_p, out_p=out_p,
        tk=tk, tm_cap=tm_cap, compute_dtype=compute_dtype,
    )
    return params


def mlp_forward(x, params, *, out_dtype=None):
    """x: [B, in_size]; params from prepare_mlp_params. Returns [B, out_size]."""
    B, in_size = x.shape
    assert in_size == params["in_size"]
    compute_dtype = params["compute_dtype"]
    in_p, mid_p, out_p = params["in_p"], params["mid_p"], params["out_p"]
    tk, tm_cap = params["tk"], params["tm_cap"]
    out_size = params["out_size"]
    if out_dtype is None:
        out_dtype = x.dtype
    csz = jnp.dtype(compute_dtype).itemsize
    osz = jnp.dtype(out_dtype).itemsize

    # Batch tile: multiple of 128; for B > 128 pick tm so the batch grid has
    # at least 2 steps (megacore sharding on v7x), never exceeding tm_cap.
    if B <= _LANE:
        tm = _LANE
    else:
        tm = min(tm_cap, _round_up(_cdiv(B, 2), _LANE))
    B_pad = max(B, tm)               # only pads (cheaply) when B < 128
    grid_m = _cdiv(B_pad, tm)
    n_k = mid_p // tk

    # x: pad/cast feature dim only (batch handled by cdiv grid; the partial
    # last tile's out-of-bounds rows are never written back).
    if B_pad == B and x.shape[1] == in_p and x.dtype == compute_dtype:
        xp = x
    else:
        xp = jnp.zeros((B_pad, in_p), compute_dtype).at[:B, :in_size].set(
            x.astype(compute_dtype))

    # VMEM limit: actual need (incl. double-buffering) + headroom, capped at
    # chip capacity minus 4 MiB.
    need = _vmem_need(tm, tk, in_p, out_p, csz, osz)
    cap = _vmem_capacity_bytes()
    vmem_limit = int(min(cap - 4 * 1024 * 1024,
                         max(need + 4 * 1024 * 1024, 16 * 1024 * 1024)))

    w_bytes = (params["w1"].size + params["w2"].size) * csz
    cost = pl.CostEstimate(
        flops=2 * B_pad * (in_p * mid_p + mid_p * out_p),
        transcendentals=0,
        bytes_accessed=(xp.size * csz
                        + w_bytes * (grid_m if n_k > 1 else 1)
                        + (params["b1"].size + params["b2"].size) * 4
                        + B_pad * out_p * osz),
    )

    out = pl.pallas_call(
        mlp_kernel,
        out_shape=jax.ShapeDtypeStruct((B_pad, out_p), out_dtype),
        grid_spec=pltpu.PrefetchScalarGridSpec(
            num_scalar_prefetch=0,
            grid=(grid_m, n_k),
            in_specs=[
                pl.BlockSpec((tm, in_p), lambda i, k: (i, 0)),    # x tile
                pl.BlockSpec((in_p, tk), lambda i, k: (0, k)),    # W1 col-chunk
                pl.BlockSpec((1, tk), lambda i, k: (0, k)),       # b1 chunk
                pl.BlockSpec((tk, out_p), lambda i, k: (k, 0)),   # W2 row-chunk
                pl.BlockSpec((1, out_p), lambda i, k: (0, 0)),    # b2
            ],
            out_specs=pl.BlockSpec((tm, out_p), lambda i, k: (i, 0)),
            scratch_shapes=[pltpu.VMEM((tm, out_p), jnp.float32)],
        ),
        compiler_params=pltpu.CompilerParams(
            dimension_semantics=("parallel", "arbitrary"),
            vmem_limit_bytes=vmem_limit,
        ),
        cost_estimate=cost,
    )(xp, params["w1"], params["b1"], params["w2"], params["b2"])

    return out[:B, :out_size]


def init_linear_params(key, in_size, out_size, dtype=jnp.float32):
    """Deterministic init mimicking torch.nn.Linear (uniform +-1/sqrt(in))."""
    k_w, k_b = jax.random.split(key)
    bound = 1.0 / jnp.sqrt(jnp.array(in_size, dtype=jnp.float32))
    # PyTorch stores weight as [out, in]; we keep the transposed [in, out] form.
    w_t = jax.random.uniform(k_w, (in_size, out_size), dtype=dtype,
                             minval=-bound, maxval=bound)
    b = jax.random.uniform(k_b, (out_size,), dtype=dtype,
                           minval=-bound, maxval=bound)
    return w_t, b


if __name__ == "__main__":
    root = jax.random.PRNGKey(0)
    k_x, k_fc, k_lin, k_x2, k_fc2, k_lin2 = jax.random.split(root, 6)

    # --- Test 1: small shapes consistent with MLP(in_size, mid_size, out_size)
    batch, in_size, mid_size, out_size = 8, 32, 64, 16
    x = jax.random.normal(k_x, (batch, in_size), dtype=jnp.float32)
    w1_t, b1 = init_linear_params(k_fc, in_size, mid_size)    # fc.linear
    w2_t, b2 = init_linear_params(k_lin, mid_size, out_size)  # final linear

    # f32 compute path: exact check against plain-JAX reference.
    p_f32 = prepare_mlp_params(w1_t, b1, w2_t, b2, compute_dtype=jnp.float32)
    out_f32 = jax.block_until_ready(mlp_forward(x, p_f32))
    ref_f32 = jnp.maximum(x @ w1_t + b1, 0.0) @ w2_t + b2
    assert out_f32.shape == (batch, out_size)
    assert jnp.allclose(out_f32, ref_f32, atol=1e-4, rtol=1e-4)

    # Default bf16 MXU path (f32 accumulation): check vs bf16 reference.
    p_bf16 = prepare_mlp_params(w1_t, b1, w2_t, b2)   # compute_dtype=bf16
    out_bf16 = jax.block_until_ready(mlp_forward(x, p_bf16))
    h_ref = jnp.maximum(
        jnp.dot(x.astype(jnp.bfloat16), w1_t.astype(jnp.bfloat16),
                preferred_element_type=jnp.float32) + b1, 0.0)
    ref_bf16 = jnp.dot(h_ref.astype(jnp.bfloat16), w2_t.astype(jnp.bfloat16),
                       preferred_element_type=jnp.float32) + b2
    assert out_bf16.shape == (batch, out_size)
    assert jnp.allclose(out_bf16, ref_bf16, atol=2e-2, rtol=2e-2)

    # --- Test 2: exercise mid-chunk accumulation (n_k > 1) and a ragged batch
    # (B not a multiple of the 128-row tile -> partial last tile, no batch pad).
    B2, in2, mid2, out2 = 130, 100, 384, 48
    x2 = jax.random.normal(k_x2, (B2, in2), dtype=jnp.float32)
    w1b, b1b = init_linear_params(k_fc2, in2, mid2)
    w2b, b2b = init_linear_params(k_lin2, mid2, out2)
    p2 = prepare_mlp_params(w1b, b1b, w2b, b2b, compute_dtype=jnp.float32,
                            mid_chunk=128)            # force 3 mid chunks
    out2_k = jax.block_until_ready(mlp_forward(x2, p2))
    ref2 = jnp.maximum(x2 @ w1b + b1b, 0.0) @ w2b + b2b
    assert out2_k.shape == (B2, out2)
    assert jnp.allclose(out2_k, ref2, atol=5e-3, rtol=5e-3)

    print("KERNEL_OK")
</pallas_src>

<mosaic_0001>
module attributes {stable_mosaic.version = 11 : i64} {
  func.func @mlp_kernel(%arg0: i32, %arg1: i32, %arg2: memref<128x128xf32, #tpu.memory_space<vmem>>, %arg3: memref<128x128xf32, #tpu.memory_space<vmem>>, %arg4: memref<1x128xf32, #tpu.memory_space<vmem>>, %arg5: memref<128x128xf32, #tpu.memory_space<vmem>>, %arg6: memref<1x128xf32, #tpu.memory_space<vmem>>, %arg7: memref<128x128xf32, #tpu.memory_space<vmem>>, %arg8: memref<128x128xf32, #tpu.memory_space<vmem>>) attributes {dimension_semantics = [#tpu.dimension_semantics<parallel>, #tpu.dimension_semantics<arbitrary>], iteration_bounds = array<i64: 1, 1>, scalar_prefetch = 0 : i64, scratch_operands = 1 : i64, tpu.core_type = #tpu.core_type<tc>, window_params = [{transform_indices = @transform_0, window_bounds = array<i64: 128, 128>}, {transform_indices = @transform_1, window_bounds = array<i64: 128, 128>}, {transform_indices = @transform_2, window_bounds = array<i64: 1, 128>}, {transform_indices = @transform_3, window_bounds = array<i64: 128, 128>}, {pipeline_mode = #tpu.pipeline_mode<synchronous>, transform_indices = @transform_4, window_bounds = array<i64: 1, 128>}, {transform_indices = @transform_5, window_bounds = array<i64: 128, 128>}]} {
    %c0_i32 = arith.constant 0 : i32
    %0 = arith.cmpi eq, %arg1, %c0_i32 : i32
    %1 = arith.extui %0 : i1 to i32
    %c0_i32_0 = arith.constant 0 : i32
    %2 = arith.cmpi ne, %1, %c0_i32_0 : i32
    scf.if %2 {
      %cst_16 = arith.constant 0.000000e+00 : f32
      %19 = vector.broadcast %cst_16 : f32 to vector<128x128xf32>
      %c0_17 = arith.constant 0 : index
      %c0_18 = arith.constant 0 : index
      %20 = vector.load %arg8[%c0_17, %c0_18] : memref<128x128xf32, #tpu.memory_space<vmem>>, vector<128x128xf32>
      tpu.vector_store %arg8[%c0_17, %c0_18], %19 {strides = array<i32>} : memref<128x128xf32, #tpu.memory_space<vmem>>, vector<128x128xf32>,
    } else {
    }
    %c0 = arith.constant 0 : index
    %c0_1 = arith.constant 0 : index
    %3 = vector.load %arg2[%c0, %c0_1] : memref<128x128xf32, #tpu.memory_space<vmem>>, vector<128x128xf32>
    %c0_2 = arith.constant 0 : index
    %c0_3 = arith.constant 0 : index
    %4 = vector.load %arg3[%c0_2, %c0_3] : memref<128x128xf32, #tpu.memory_space<vmem>>, vector<128x128xf32>
    %cst = arith.constant dense<0.000000e+00> : vector<128x128xf32>
    %5 = tpu.matmul %3, %4, %cst {dimension_numbers = #tpu.dot_dimension_numbers<[1], [0], [0], [1], [0, 0, 1, 1], [], []>} : vector<128x128xf32>, vector<128x128xf32>, vector<128x128xf32> -> vector<128x128xf32>
    %c0_4 = arith.constant 0 : index
    %c0_5 = arith.constant 0 : index
    %6 = vector.load %arg4[%c0_4, %c0_5] : memref<1x128xf32, #tpu.memory_space<vmem>>, vector<1x128xf32>
    %7 = vector.broadcast %6 : vector<1x128xf32> to vector<128x128xf32>
    %8 = arith.addf %5, %7 : vector<128x128xf32>
    %cst_6 = arith.constant 0.000000e+00 : f32
    %9 = vector.broadcast %cst_6 : f32 to vector<128x128xf32>
    %10 = arith.maximumf %8, %9 : vector<128x128xf32>
    %c0_7 = arith.constant 0 : index
    %c0_8 = arith.constant 0 : index
    %11 = vector.load %arg8[%c0_7, %c0_8] : memref<128x128xf32, #tpu.memory_space<vmem>>, vector<128x128xf32>
    %c0_9 = arith.constant 0 : index
    %c0_10 = arith.constant 0 : index
    %12 = vector.load %arg5[%c0_9, %c0_10] : memref<128x128xf32, #tpu.memory_space<vmem>>, vector<128x128xf32>
    %cst_11 = arith.constant dense<0.000000e+00> : vector<128x128xf32>
    %13 = tpu.matmul %10, %12, %cst_11 {dimension_numbers = #tpu.dot_dimension_numbers<[1], [0], [0], [1], [0, 0, 1, 1], [], []>} : vector<128x128xf32>, vector<128x128xf32>, vector<128x128xf32> -> vector<128x128xf32>
    %14 = arith.addf %11, %13 : vector<128x128xf32>
    %c0_12 = arith.constant 0 : index
    %c0_13 = arith.constant 0 : index
    %15 = vector.load %arg8[%c0_12, %c0_13] : memref<128x128xf32, #tpu.memory_space<vmem>>, vector<128x128xf32>
    tpu.vector_store %arg8[%c0_12, %c0_13], %14 {strides = array<i32>} : memref<128x128xf32, #tpu.memory_space<vmem>>, vector<128x128xf32>,
    %c0_i32_14 = arith.constant 0 : i32
    %16 = arith.cmpi eq, %arg1, %c0_i32_14 : i32
    %17 = arith.extui %16 : i1 to i32
    %c0_i32_15 = arith.constant 0 : i32
    %18 = arith.cmpi ne, %17, %c0_i32_15 : i32
    scf.if %18 {
      %c0_16 = arith.constant 0 : index
      %c0_17 = arith.constant 0 : index
      %19 = vector.load %arg8[%c0_16, %c0_17] : memref<128x128xf32, #tpu.memory_space<vmem>>, vector<128x128xf32>
      %c0_18 = arith.constant 0 : index
      %c0_19 = arith.constant 0 : index
      %20 = vector.load %arg6[%c0_18, %c0_19] : memref<1x128xf32, #tpu.memory_space<vmem>>, vector<1x128xf32>
      %21 = vector.broadcast %20 : vector<1x128xf32> to vector<128x128xf32>
      %22 = arith.addf %19, %21 : vector<128x128xf32>
      %c0_20 = arith.constant 0 : index
      %c0_21 = arith.constant 0 : index
      %23 = vector.load %arg7[%c0_20, %c0_21] : memref<128x128xf32, #tpu.memory_space<vmem>>, vector<128x128xf32>
      tpu.vector_store %arg7[%c0_20, %c0_21], %22 {strides = array<i32>} : memref<128x128xf32, #tpu.memory_space<vmem>>, vector<128x128xf32>,
    } else {
    }
    return
  }
  func.func @transform_0(%arg0: i32, %arg1: i32) -> (i32, i32) {
    %c0_i32 = arith.constant 0 : i32
    %c0_i32_0 = arith.constant 0 : i32
    return %arg0, %c0_i32 : i32, i32
  }
  func.func @transform_1(%arg0: i32, %arg1: i32) -> (i32, i32) {
    %c0_i32 = arith.constant 0 : i32
    %c0_i32_0 = arith.constant 0 : i32
    return %c0_i32, %arg1 : i32, i32
  }
  func.func @transform_2(%arg0: i32, %arg1: i32) -> (i32, i32) {
    %c0_i32 = arith.constant 0 : i32
    %c0_i32_0 = arith.constant 0 : i32
    return %c0_i32, %arg1 : i32, i32
  }
  func.func @transform_3(%arg0: i32, %arg1: i32) -> (i32, i32) {
    %c0_i32 = arith.constant 0 : i32
    %c0_i32_0 = arith.constant 0 : i32
    return %arg1, %c0_i32 : i32, i32
  }
  func.func @transform_4(%arg0: i32, %arg1: i32) -> (i32, i32) {
    %c0_i32 = arith.constant 0 : i32
    %c0_i32_0 = arith.constant 0 : i32
    %c0_i32_1 = arith.constant 0 : i32
    return %c0_i32, %c0_i32_0 : i32, i32
  }
  func.func @transform_5(%arg0: i32, %arg1: i32) -> (i32, i32) {
    %c0_i32 = arith.constant 0 : i32
    %c0_i32_0 = arith.constant 0 : i32
    return %arg0, %c0_i32 : i32, i32
  }
}

</mosaic_0001>

<bundles_post_ra>
// kernel: tpu_custom_call.1
= control target key start
LH: loop header
LB: loop body
LE: loop exit
PB: predicated region body
PF: predicated region fallthrough
CT: control target
= control target key end

     0   :  { %10 = vsyncpa [#allocation4], 0  ;;  %s903_s0 = inlined_call_operand.hbm [shape: f32[128,128], index: 0, kind: input, shape index: {}]   ;;  %s904_s1 = inlined_call_operand.hbm [shape: f32[128,128], index: 1, kind: input, shape index: {}]   ;;  %s905_s2 = inlined_call_operand.vmem [shape: f32[1,128], index: 2, kind: input, shape index: {}]   ;;  %s906_s3 = inlined_call_operand.hbm [shape: f32[128,128], index: 3, kind: input, shape index: {}]   ;;  %s907_s4 = inlined_call_operand.vmem [shape: f32[1,128], index: 4, kind: input, shape index: {}]   ;;  %s908_s5 = inlined_call_operand.hbm [shape: f32[128,128], index: 5, kind: output, shape index: {}]  }
   0x1   :  { %11 = vsyncpa [#allocation7], 0 }
   0x2   :  { %12 = vsyncpa [#allocation5], 0  ;;  %s837_s18 = smov [#allocation6]   ;;  %s838_s20 = smov [#allocation3]  }
   0x3   :  { %s30_s19 = sshll.u32 %s837_s18, 4  ;;  %s18_s21 = sshll.u32 %s838_s20, 4  ;;  %s31_s19 = int_to_ptr.vmem [resolvable:$true] %s30_s19  ;;  %s19_s21 = int_to_ptr.vmem [resolvable:$true] %s18_s21 }
   0x4   :  { %s759_s22 = scalar_lea.vmem %s31_s19, 2048  ;;  %p764_p1 = scmp.lt.s32.totalorder %s31_s19, %s31_s19 }
   0x5   :  { %p760_p0 = scmp.ne.s32.totalorder %s31_s19, %s759_s22  ;;  %p765_p2 = scmp.lt.s32.totalorder %s759_s22, %s759_s22 }
   0x7   :  { %p766_p3 = por %p765_p2, %p764_p1 }
   0x9   :  { %p767_p4 = pnand %p766_p3, %p760_p0 }
   0xb   :  { %770 = shalt.err (!%p767_p4)
}
   0xc   :  { %s839_s23 = smov 128   ;;  %s840_s24 = smov 8  }
   0xd   :  { %36 = dma.hbm_to_vmem [thread:$0]  %s904_s1, 2048, %s31_s19, [#allocation7], %s839_s23, %s839_s23, %s840_s24  }
   0xe   :  { %s779_s27 = scalar_lea.vmem %s19_s21, 2048  ;;  %p784_p6 = scmp.lt.s32.totalorder %s19_s21, %s19_s21 }
   0xf   :  { %p780_p5 = scmp.ne.s32.totalorder %s19_s21, %s779_s27  ;;  %p785_p7 = scmp.lt.s32.totalorder %s779_s27, %s779_s27 }
  0x11   :  { %p786_p8 = por %p785_p7, %p784_p6 }
  0x13   :  { %p787_p9 = pnand %p786_p8, %p780_p5 }
  0x15   :  { %790 = shalt.err (!%p787_p9)
}
  0x16   :  { %24 = dma.hbm_to_vmem [thread:$0]  %s903_s0, 2048, %s19_s21, [#allocation4], %s839_s23, %s839_s23, %s840_s24  }
  0x17   :  { %s841_s30 = smov [#allocation8]  }
  0x18   :  { %s44_s6 = sshll.u32 %s841_s30, 4  ;;  %s45_s6 = int_to_ptr.vmem [resolvable:$true] %s44_s6 }
  0x19   :  { %s799_s7 = scalar_lea.vmem %s45_s6, 2048  ;;  %p804_p11 = scmp.lt.s32.totalorder %s45_s6, %s45_s6 }
  0x1a   :  { %p800_p10 = scmp.ne.s32.totalorder %s45_s6, %s799_s7  ;;  %p805_p12 = scmp.lt.s32.totalorder %s799_s7, %s799_s7 }
  0x1c   :  { %p806_p13 = por %p805_p12, %p804_p11 }
  0x1e   :  { %p807_p0 = pnand %p806_p13, %p800_p10 }
  0x20   :  { %810 = shalt.err (!%p807_p0)
}
  0x21   :  { %50 = dma.hbm_to_vmem [thread:$0]  %s906_s3, 2048, %s45_s6, [#allocation7], %s839_s23, %s839_s23, %s840_s24  }
  0x22   :  { %831 = dma.done.wait [#allocation4], 2048  }
  0x23   :  { %832 = vsyncadd [#allocation4], 4294965248 }
  0x24   :  { %833 = dma.done.wait [#allocation7], 4096  }
  0x25   :  { %834 = vsyncadd [#allocation7], 4294963200  ;;  %v113_v0 = vld [vmem:[#allocation6 + $0x78] sm:$0xff]  ;;  %v112_v1 = vld [vmem:[#allocation6 + $0x70] sm:$0xff] }
  0x26   :  { %633 = vmatprep.subr.mxu0 %v113_v0  ;;  %v111_v2 = vld [vmem:[#allocation6 + $0x68] sm:$0xff]  ;;  %v110_v3 = vld [vmem:[#allocation6 + $0x60] sm:$0xff]  ;;  %v109_v5 = vld [vmem:[#allocation6 + $0x58] sm:$0xff] }
  0x27   :  { %634 = vmatpush3.msra.mxu0 %v113_v0  ;;  %v82_v4 = vld [vmem:[#allocation3] sm:$0xff]  ;;  %v108_v6 = vld [vmem:[#allocation6 + $0x50] sm:$0xff]  ;;  %v107_v7 = vld [vmem:[#allocation6 + $0x48] sm:$0xff] }
  0x28   :  { %635 = vmatprep.subr.mxu0 %v112_v1  ;;  %665 = vmatprep.mubr.f32.mxu0 %v82_v4  ;;  %v313_v8 = vld [vmem:[#allocation8 + $0x78] sm:$0xff]  ;;  %v312_v9 = vld [vmem:[#allocation8 + $0x70] sm:$0xff]  ;;  %v106_v10 = vld [vmem:[#allocation6 + $0x40] sm:$0xff] }
  0x29   :  { %636 = vmatpush3.msra.mxu0 %v112_v1  ;;  %689 = vmatprep.subr.mxu1 %v313_v8  ;;  %v311_v11 = vld [vmem:[#allocation8 + $0x68] sm:$0xff]  ;;  %v105_v12 = vld [vmem:[#allocation6 + $0x38] sm:$0xff]  ;;  %v310_v13 = vld [vmem:[#allocation8 + $0x60] sm:$0xff] }
  0x2a   :  { %637 = vmatprep.subr.mxu0 %v111_v2  ;;  %690 = vmatpush3.msra.mxu1 %v313_v8  ;;  %v104_v14 = vld [vmem:[#allocation6 + $0x30] sm:$0xff]  ;;  %v309_v15 = vld [vmem:[#allocation8 + $0x58] sm:$0xff]  ;;  %v103_v16 = vld [vmem:[#allocation6 + $0x28] sm:$0xff] }
  0x2b   :  { %638 = vmatpush3.msra.mxu0 %v111_v2  ;;  %691 = vmatprep.subr.mxu1 %v312_v9  ;;  %v308_v17 = vld [vmem:[#allocation8 + $0x50] sm:$0xff]  ;;  %v102_v18 = vld [vmem:[#allocation6 + $0x20] sm:$0xff]  ;;  %v307_v19 = vld [vmem:[#allocation8 + $0x48] sm:$0xff] }
  0x2c   :  { %639 = vmatprep.subr.mxu0 %v110_v3  ;;  %692 = vmatpush3.msra.mxu1 %v312_v9  ;;  %v101_v20 = vld [vmem:[#allocation6 + $0x18] sm:$0xff]  ;;  %v306_v21 = vld [vmem:[#allocation8 + $0x40] sm:$0xff]  ;;  %v100_v22 = vld [vmem:[#allocation6 + $0x10] sm:$0xff] }
  0x2d   :  { %640 = vmatpush3.msra.mxu0 %v110_v3  ;;  %693 = vmatprep.subr.mxu1 %v311_v11  ;;  %v305_v23 = vld [vmem:[#allocation8 + $0x38] sm:$0xff]  ;;  %v99_v24 = vld [vmem:[#allocation6 + $0x8] sm:$0xff]  ;;  %v304_v25 = vld [vmem:[#allocation8 + $0x30] sm:$0xff] }
  0x2e   :  { %641 = vmatprep.subr.mxu0 %v109_v5  ;;  %694 = vmatpush3.msra.mxu1 %v311_v11  ;;  %v98_v26 = vld [vmem:[#allocation6] sm:$0xff]  ;;  %v303_v27 = vld [vmem:[#allocation8 + $0x28] sm:$0xff]  ;;  %v84_v30 = vld [vmem:[#allocation3 + $0x10] sm:$0xff] }
  0x2f   :  { %642 = vmatpush3.msra.mxu0 %v109_v5  ;;  %695 = vmatprep.subr.mxu1 %v310_v13  ;;  %v83_v28 = vld [vmem:[#allocation3 + $0x8] sm:$0xff]  ;;  %v302_v29 = vld [vmem:[#allocation8 + $0x20] sm:$0xff]  ;;  %v85_v31 = vld [vmem:[#allocation3 + $0x18] sm:$0xff] }
  0x30   :  { %643 = vmatprep.subr.mxu0 %v108_v6  ;;  %696 = vmatpush3.msra.mxu1 %v310_v13  ;;  %v86_v32 = vld [vmem:[#allocation3 + $0x20] sm:$0xff]  ;;  %v87_v33 = vld [vmem:[#allocation3 + $0x28] sm:$0xff]  ;;  %v88_v34 = vld [vmem:[#allocation3 + $0x30] sm:$0xff] }
  0x31   :  { %644 = vmatpush3.msra.mxu0 %v108_v6  ;;  %697 = vmatprep.subr.mxu1 %v309_v15  ;;  %v89_v35 = vld [vmem:[#allocation3 + $0x38] sm:$0xff]  ;;  %v90_v36 = vld [vmem:[#allocation3 + $0x40] sm:$0xff]  ;;  %v91_v37 = vld [vmem:[#allocation3 + $0x48] sm:$0xff] }
  0x32   :  { %645 = vmatprep.subr.mxu0 %v107_v7  ;;  %698 = vmatpush3.msra.mxu1 %v309_v15  ;;  %v92_v38 = vld [vmem:[#allocation3 + $0x50] sm:$0xff]  ;;  %v93_v39 = vld [vmem:[#allocation3 + $0x58] sm:$0xff]  ;;  %v94_v40 = vld [vmem:[#allocation3 + $0x60] sm:$0xff] }
  0x33   :  { %646 = vmatpush3.msra.mxu0 %v107_v7  ;;  %699 = vmatprep.subr.mxu1 %v308_v17  ;;  %v95_v41 = vld [vmem:[#allocation3 + $0x68] sm:$0xff]  ;;  %v96_v42 = vld [vmem:[#allocation3 + $0x70] sm:$0xff]  ;;  %v97_v43 = vld [vmem:[#allocation3 + $0x78] sm:$0xff] }
  0x34   :  { %647 = vmatprep.subr.mxu0 %v106_v10  ;;  %700 = vmatpush3.msra.mxu1 %v308_v17  ;;  %v301_v44 = vld [vmem:[#allocation8 + $0x18] sm:$0xff]  ;;  %v300_v45 = vld [vmem:[#allocation8 + $0x10] sm:$0xff]  ;;  %v299_v46 = vld [vmem:[#allocation8 + $0x8] sm:$0xff] }
  0x35   :  { %648 = vmatpush3.msra.mxu0 %v106_v10  ;;  %701 = vmatprep.subr.mxu1 %v307_v19  ;;  %v298_v47 = vld [vmem:[#allocation8] sm:$0xff] }
  0x36   :  { %649 = vmatprep.subr.mxu0 %v105_v12  ;;  %702 = vmatpush3.msra.mxu1 %v307_v19  ;;  %v567_v48 = vld [vmem:[%s905_s2] ss:$0 sm:$0xff] }
  0x37   :  { %650 = vmatpush3.msra.mxu0 %v105_v12  ;;  %703 = vmatprep.subr.mxu1 %v306_v21 }
  0x38   :  { %651 = vmatprep.subr.mxu0 %v104_v14  ;;  %704 = vmatpush3.msra.mxu1 %v306_v21 }
  0x39   :  { %652 = vmatpush3.msra.mxu0 %v104_v14  ;;  %705 = vmatprep.subr.mxu1 %v305_v23 }
  0x3a   :  { %653 = vmatprep.subr.mxu0 %v103_v16  ;;  %706 = vmatpush3.msra.mxu1 %v305_v23 }
  0x3b   :  { %654 = vmatpush3.msra.mxu0 %v103_v16  ;;  %707 = vmatprep.subr.mxu1 %v304_v25 }
  0x3c   :  { %655 = vmatprep.subr.mxu0 %v102_v18  ;;  %708 = vmatpush3.msra.mxu1 %v304_v25 }
  0x3d   :  { %656 = vmatpush3.msra.mxu0 %v102_v18  ;;  %709 = vmatprep.subr.mxu1 %v303_v27 }
  0x3e   :  { %657 = vmatprep.subr.mxu0 %v101_v20  ;;  %710 = vmatpush3.msra.mxu1 %v303_v27 }
  0x3f   :  { %658 = vmatpush3.msra.mxu0 %v101_v20  ;;  %711 = vmatprep.subr.mxu1 %v302_v29 }
  0x40   :  { %659 = vmatprep.subr.mxu0 %v100_v22  ;;  %712 = vmatpush3.msra.mxu1 %v302_v29 }
  0x41   :  { %660 = vmatpush3.msra.mxu0 %v100_v22  ;;  %713 = vmatprep.subr.mxu1 %v301_v44 }
  0x42   :  { %661 = vmatprep.subr.mxu0 %v99_v24  ;;  %714 = vmatpush3.msra.mxu1 %v301_v44 }
  0x43   :  { %662 = vmatpush3.msra.mxu0 %v99_v24  ;;  %715 = vmatprep.subr.mxu1 %v300_v45 }
  0x44   :  { %663 = vmatprep.subr.mxu0 %v98_v26  ;;  %716 = vmatpush3.msra.mxu1 %v300_v45 }
  0x45   :  { %664 = vmatpush3.msra.mxu0 %v98_v26  ;;  %717 = vmatprep.subr.mxu1 %v299_v46 }
  0x46   :  { %666 = vmatmul.mubr.f32.vlgmr.msra.gmra.mxu0 %v83_v28  ;;  %718 = vmatpush3.msra.mxu1 %v299_v46 }
  0x47   :  { %668 = vmatprep.mubr.f32.mxu0 %v84_v30  ;;  %719 = vmatprep.subr.mxu1 %v298_v47 }
  0x48   :  { %720 = vmatpush3.msra.mxu1 %v298_v47 }
  0x4a   :  { %669 = vmatmul.mubr.f32.gmra.mxu0 %v85_v31 }
  0x4b   :  { %671 = vmatprep.mubr.f32.mxu0 %v86_v32 }
  0x4e   :  { %672 = vmatmul.mubr.f32.gmra.mxu0 %v87_v33  ;;  %v568_v33 = vld [vmem:[%s907_s4] ss:$0 sm:$0xff]  ;;  %s842_s4 = smov [#allocation9]  }
  0x4f   :  { %674 = vmatprep.mubr.f32.mxu0 %v88_v34  ;;  %s554_s10 = sshll.u32 %s842_s4, 4  ;;  %s555_s10 = int_to_ptr.vmem [resolvable:$true] %s554_s10 }
  0x50   :  { %s811_s11 = scalar_lea.vmem %s555_s10, 2048  ;;  %p816_p2 = scmp.lt.s32.totalorder %s555_s10, %s555_s10 }
  0x51   :  { %p812_p1 = scmp.ne.s32.totalorder %s555_s10, %s811_s11  ;;  %p817_p3 = scmp.lt.s32.totalorder %s811_s11, %s811_s11 }
  0x52   :  { %675 = vmatmul.mubr.f32.gmra.mxu0 %v89_v35 }
  0x53   :  { %677 = vmatprep.mubr.f32.mxu0 %v90_v36  ;;  %p818_p4 = por %p817_p3, %p816_p2 }
  0x55   :  { %p819_p5 = pnand %p818_p4, %p812_p1 }
  0x56   :  { %678 = vmatmul.mubr.f32.gmra.mxu0 %v91_v37 }
  0x57   :  { %680 = vmatprep.mubr.f32.mxu0 %v92_v38 }
  0x5a   :  { %681 = vmatmul.mubr.f32.gmra.mxu0 %v93_v39 }
  0x5b   :  { %683 = vmatprep.mubr.f32.mxu0 %v94_v40 }
  0x5e   :  { %684 = vmatmul.mubr.f32.gmra.mxu0 %v95_v41 }
  0x5f   :  { %686 = vmatprep.mubr.f32.mxu0 %v96_v42 }
  0x62   :  { %687 = vmatmul.mubr.f32.gmra.mxu0 %v97_v43 }
 0x106   :  { %v667_v49 = vpop.f32.mrf.mxu0 }
 0x107   :  { %v193_v50 = vadd.f32 %v667_v49, %v567_v48 }
 0x108   :  { %v187_v51 = vpop.f32.mrf.mxu0 }
 0x109   :  { %v188_v52 = vadd.f32 %v567_v48, %v187_v51  ;;  %v267_v55 = vmax.f32 %v193_v50, 0.0 }
 0x10a   :  { %v670_v53 = vpop.f32.mrf.mxu0 }
 0x10b   :  { %v266_v54 = vmax.f32 %v188_v52, 0.0  ;;  %v203_v56 = vadd.f32 %v670_v53, %v567_v48 }
 0x10c   :  { %v197_v57 = vpop.f32.mrf.mxu0 }
 0x10d   :  { %v198_v58 = vadd.f32 %v567_v48, %v197_v57  ;;  %721 = vmatprep.mubr.f32.mxu1 %v266_v54  ;;  %v269_v61 = vmax.f32 %v203_v56, 0.0 }
 0x10e   :  { %v673_v59 = vpop.f32.mrf.mxu0  ;;  %722 = vmatmul.mubr.f32.vlgmr.msra.gmra.mxu1 %v267_v55 }
 0x10f   :  { %v268_v60 = vmax.f32 %v198_v58, 0.0  ;;  %v213_v62 = vadd.f32 %v673_v59, %v567_v48 }
 0x110   :  { %v207_v63 = vpop.f32.mrf.mxu0 }
 0x111   :  { %v208_v0 = vadd.f32 %v567_v48, %v207_v63  ;;  %724 = vmatprep.mubr.f32.mxu1 %v268_v60  ;;  %v271_v3 = vmax.f32 %v213_v62, 0.0 }
 0x112   :  { %v676_v1 = vpop.f32.mrf.mxu0  ;;  %725 = vmatmul.mubr.f32.gmra.mxu1 %v269_v61 }
 0x113   :  { %v270_v2 = vmax.f32 %v208_v0, 0.0  ;;  %v223_v4 = vadd.f32 %v676_v1, %v567_v48 }
 0x114   :  { %v217_v5 = vpop.f32.mrf.mxu0 }
 0x115   :  { %v218_v6 = vadd.f32 %v567_v48, %v217_v5  ;;  %727 = vmatprep.mubr.f32.mxu1 %v270_v2  ;;  %v273_v9 = vmax.f32 %v223_v4, 0.0 }
 0x116   :  { %v679_v7 = vpop.f32.mrf.mxu0  ;;  %728 = vmatmul.mubr.f32.gmra.mxu1 %v271_v3 }
 0x117   :  { %v272_v8 = vmax.f32 %v218_v6, 0.0  ;;  %v233_v10 = vadd.f32 %v679_v7, %v567_v48 }
 0x118   :  { %v227_v11 = vpop.f32.mrf.mxu0 }
 0x119   :  { %v228_v12 = vadd.f32 %v567_v48, %v227_v11  ;;  %730 = vmatprep.mubr.f32.mxu1 %v272_v8  ;;  %v275_v15 = vmax.f32 %v233_v10, 0.0 }
 0x11a   :  { %v682_v13 = vpop.f32.mrf.mxu0  ;;  %731 = vmatmul.mubr.f32.gmra.mxu1 %v273_v9 }
 0x11b   :  { %v274_v14 = vmax.f32 %v228_v12, 0.0  ;;  %v243_v16 = vadd.f32 %v682_v13, %v567_v48 }
 0x11c   :  { %v237_v17 = vpop.f32.mrf.mxu0 }
 0x11d   :  { %v238_v18 = vadd.f32 %v567_v48, %v237_v17  ;;  %733 = vmatprep.mubr.f32.mxu1 %v274_v14  ;;  %v277_v21 = vmax.f32 %v243_v16, 0.0 }
 0x11e   :  { %v685_v19 = vpop.f32.mrf.mxu0  ;;  %734 = vmatmul.mubr.f32.gmra.mxu1 %v275_v15 }
 0x11f   :  { %v276_v20 = vmax.f32 %v238_v18, 0.0  ;;  %v253_v22 = vadd.f32 %v685_v19, %v567_v48 }
 0x120   :  { %v247_v23 = vpop.f32.mrf.mxu0 }
 0x121   :  { %v248_v24 = vadd.f32 %v567_v48, %v247_v23  ;;  %736 = vmatprep.mubr.f32.mxu1 %v276_v20  ;;  %v279_v27 = vmax.f32 %v253_v22, 0.0 }
 0x122   :  { %v688_v25 = vpop.f32.mrf.mxu0  ;;  %737 = vmatmul.mubr.f32.gmra.mxu1 %v277_v21 }
 0x123   :  { %v278_v26 = vmax.f32 %v248_v24, 0.0  ;;  %v263_v28 = vadd.f32 %v688_v25, %v567_v48 }
 0x124   :  { %v257_v29 = vpop.f32.mrf.mxu0 }
 0x125   :  { %v258_v30 = vadd.f32 %v567_v48, %v257_v29  ;;  %739 = vmatprep.mubr.f32.mxu1 %v278_v26  ;;  %v281_v32 = vmax.f32 %v263_v28, 0.0 }
 0x126   :  { %740 = vmatmul.mubr.f32.gmra.mxu1 %v279_v27 }
 0x127   :  { %v280_v31 = vmax.f32 %v258_v30, 0.0 }
 0x129   :  { %742 = vmatprep.mubr.f32.mxu1 %v280_v31 }
 0x12a   :  { %743 = vmatmul.mubr.f32.gmra.mxu1 %v281_v32 }
 0x1ce   :  { %v723_v34 = vpop.f32.mrf.mxu1 }
 0x1cf   :  { %v518_v35 = vadd.f32 %v723_v34, %v568_v33 }
 0x1d0   :  { %v380_v36 = vpop.f32.mrf.mxu1 }
 0x1d1   :  { %534 = vst [vmem:[#allocation9 + $0x8] sm:$0xff] %v518_v35  ;;  %v517_v37 = vadd.f32 %v568_v33, %v380_v36 }
 0x1d2   :  { %v726_v38 = vpop.f32.mrf.mxu1 }
 0x1d3   :  { %533 = vst [vmem:[#allocation9] sm:$0xff] %v517_v37  ;;  %v520_v39 = vadd.f32 %v726_v38, %v568_v33 }
 0x1d4   :  { %v390_v40 = vpop.f32.mrf.mxu1 }
 0x1d5   :  { %536 = vst [vmem:[#allocation9 + $0x18] sm:$0xff] %v520_v39  ;;  %v519_v41 = vadd.f32 %v568_v33, %v390_v40 }
 0x1d6   :  { %v729_v42 = vpop.f32.mrf.mxu1 }
 0x1d7   :  { %535 = vst [vmem:[#allocation9 + $0x10] sm:$0xff] %v519_v41  ;;  %v522_v43 = vadd.f32 %v729_v42, %v568_v33 }
 0x1d8   :  { %v400_v44 = vpop.f32.mrf.mxu1 }
 0x1d9   :  { %538 = vst [vmem:[#allocation9 + $0x28] sm:$0xff] %v522_v43  ;;  %v521_v45 = vadd.f32 %v568_v33, %v400_v44 }
 0x1da   :  { %v732_v46 = vpop.f32.mrf.mxu1 }
 0x1db   :  { %537 = vst [vmem:[#allocation9 + $0x20] sm:$0xff] %v521_v45  ;;  %v524_v47 = vadd.f32 %v732_v46, %v568_v33 }
 0x1dc   :  { %v410_v48 = vpop.f32.mrf.mxu1 }
 0x1dd   :  { %540 = vst [vmem:[#allocation9 + $0x38] sm:$0xff] %v524_v47  ;;  %v523_v49 = vadd.f32 %v568_v33, %v410_v48 }
 0x1de   :  { %v735_v50 = vpop.f32.mrf.mxu1 }
 0x1df   :  { %539 = vst [vmem:[#allocation9 + $0x30] sm:$0xff] %v523_v49  ;;  %v526_v51 = vadd.f32 %v735_v50, %v568_v33 }
 0x1e0   :  { %v420_v52 = vpop.f32.mrf.mxu1 }
 0x1e1   :  { %542 = vst [vmem:[#allocation9 + $0x48] sm:$0xff] %v526_v51  ;;  %v525_v53 = vadd.f32 %v568_v33, %v420_v52 }
 0x1e2   :  { %v738_v54 = vpop.f32.mrf.mxu1 }
 0x1e3   :  { %541 = vst [vmem:[#allocation9 + $0x40] sm:$0xff] %v525_v53  ;;  %v528_v55 = vadd.f32 %v738_v54, %v568_v33 }
 0x1e4   :  { %v430_v56 = vpop.f32.mrf.mxu1 }
 0x1e5   :  { %544 = vst [vmem:[#allocation9 + $0x58] sm:$0xff] %v528_v55  ;;  %v527_v57 = vadd.f32 %v568_v33, %v430_v56 }
 0x1e6   :  { %v741_v58 = vpop.f32.mrf.mxu1 }
 0x1e7   :  { %543 = vst [vmem:[#allocation9 + $0x50] sm:$0xff] %v527_v57  ;;  %v530_v59 = vadd.f32 %v741_v58, %v568_v33 }
 0x1e8   :  { %v440_v60 = vpop.f32.mrf.mxu1 }
 0x1e9   :  { %546 = vst [vmem:[#allocation9 + $0x68] sm:$0xff] %v530_v59  ;;  %v529_v61 = vadd.f32 %v568_v33, %v440_v60 }
 0x1ea   :  { %v744_v62 = vpop.f32.mrf.mxu1 }
 0x1eb   :  { %545 = vst [vmem:[#allocation9 + $0x60] sm:$0xff] %v529_v61  ;;  %v532_v63 = vadd.f32 %v744_v62, %v568_v33 }
 0x1ec   :  { %v450_v0 = vpop.f32.mrf.mxu1 }
 0x1ed   :  { %548 = vst [vmem:[#allocation9 + $0x78] sm:$0xff] %v532_v63  ;;  %v531_v1 = vadd.f32 %v568_v33, %v450_v0 }
 0x1ef   :  { %547 = vst [vmem:[#allocation9 + $0x70] sm:$0xff] %v531_v1 }
 0x1f0   :  { %822 = shalt.err (!%p819_p5)
}
 0x1f1   :  { %560 = dma.vmem_to_hbm [thread:$0]  %s555_s10, 2048, %s908_s5, [#allocation5], %s839_s23, %s839_s23, %s840_s24  }
 0x1f2   :  { %835 = dma.done.wait [#allocation5], 2048  }
 0x1f3   :  { %836 = vsyncadd [#allocation5], 4294965248 }
 0x1f4   :  { %564 = vsyncpa [#allocation4], 1 }
 0x1f5   :  { %565 = vsyncpa [#allocation7], 1 }
 0x1f6   :  { %566 = vsyncpa [#allocation5], 1 }

</bundles_post_ra>
